<compile_context>
chip_gen: v6e
topology: v6e:2x2x1
jax: 0.10.0
libtpu: 0.0.40
codegen_flags: <defaults>
</compile_context>

<pallas_src>
import jax
import jax.numpy as jnp
from jax.experimental import pallas as pl
from jax.experimental.pallas import tpu as pltpu

_LANE = 128


def _mlp_kernel(x_ref, w1_ref, b1_ref, w2_ref, b2_ref, o_ref):
    # ---- Layer 1: contraction dim (n_features) is tiny -> VPU FMAs, no MXU.
    x = x_ref[...]                           # (B, F) f32
    w1 = w1_ref[...]                         # (F, Hp=128) f32, zero-padded rows
    acc = x[:, 0:1] * w1[0:1, :]             # (B, Hp) via lane/sublane broadcast
    for k in range(1, x.shape[1]):           # statically unrolled (F is tiny)
        acc = acc + x[:, k:k + 1] * w1[k:k + 1, :]
    h = jnp.maximum(acc + b1_ref[...], 0.0)  # (B, Hp) f32 — no downcast

    # ---- Layer 2 on the MXU: (B, Hp) @ (Hp, O). Store the logical-width
    # result directly; the narrow masked store is a few cycles, far cheaper
    # than padding + a separate post-call slice op.
    out = jnp.dot(h, w2_ref[...], preferred_element_type=jnp.float32)
    o_ref[...] = (out + b2_ref[...]).astype(o_ref.dtype)


def prepare_params(w1, b1, w2, b2):
    """One-time layout glue, kept OFF the per-call path.

    Accepts PyTorch-style nn.Linear params (W: (out, in), b: (out,)) and returns
    kernel-ready arrays: weights in (in, out) layout with the HIDDEN dim
    zero-padded to a lane-dense 128. The output width is left at its logical
    size (no padding, no post-slice).
    """
    n_hidden, n_features = w1.shape
    n_output = w2.shape[0]
    n_hidden_pad = max(_LANE, pl.cdiv(n_hidden, _LANE) * _LANE)

    # W1: (H, F) -> (F, Hp)
    w1_p = jnp.zeros((n_features, n_hidden_pad), jnp.float32)
    w1_p = w1_p.at[:, :n_hidden].set(jnp.asarray(w1, jnp.float32).T)
    # b1: (H,) -> (1, Hp)
    b1_p = jnp.zeros((1, n_hidden_pad), jnp.float32)
    b1_p = b1_p.at[:, :n_hidden].set(jnp.asarray(b1, jnp.float32))
    # W2: (O, H) -> (Hp, O); padded rows are zero so results are exact.
    w2_p = jnp.zeros((n_hidden_pad, n_output), jnp.float32)
    w2_p = w2_p.at[:n_hidden, :].set(jnp.asarray(w2, jnp.float32).T)
    # b2: (O,) -> (1, O)
    b2_p = jnp.asarray(b2, jnp.float32).reshape(1, n_output)
    return w1_p, b1_p, w2_p, b2_p


@jax.jit
def net_forward(x, w1_p, b1_p, w2_p, b2_p):
    """x: (B, n_features) f32; params from prepare_params()."""
    batch, n_features = x.shape
    n_hidden_pad = w1_p.shape[1]
    n_output = w2_p.shape[1]

    # Honest estimate of the work this call physically performs.
    flops = 2 * batch * (n_features * n_hidden_pad + n_hidden_pad * n_output)
    bytes_accessed = 4 * (x.size + w1_p.size + b1_p.size + w2_p.size
                          + b2_p.size + batch * n_output)
    cost = pl.CostEstimate(flops=flops, transcendentals=0,
                           bytes_accessed=bytes_accessed)

    vmem = pl.BlockSpec(memory_space=pltpu.MemorySpace.VMEM)
    # Gridless: the whole problem fits comfortably in VMEM on v5e/v6e/v7x;
    # any grid step would add ~0.35 us overhead that exceeds the compute here.
    return pl.pallas_call(
        _mlp_kernel,
        out_shape=jax.ShapeDtypeStruct((batch, n_output), x.dtype),
        in_specs=[vmem] * 5,
        out_specs=vmem,
        cost_estimate=cost,
    )(x, w1_p, b1_p, w2_p, b2_p)


def net_forward_ref(x, w1, b1, w2, b2):
    """Pure-JAX reference matching torch nn.Linear semantics exactly."""
    h = jnp.maximum(x @ w1.T + b1, 0.0)
    return h @ w2.T + b2


if __name__ == "__main__":
    # Shapes implied by the script: n_features=2, n_hidden=10, n_output=2,
    # data x = cat(x0, x1) with 100 rows each -> batch=200.
    n_features, n_hidden, n_output = 2, 10, 2
    batch = 200

    key = jax.random.PRNGKey(0)
    kx0, kx1, kw1, kb1, kw2, kb2 = jax.random.split(key, 6)

    # Synthetic data mimicking torch.normal(+/-2, 1) clusters.
    x0 = 2.0 + jax.random.normal(kx0, (batch // 2, n_features), dtype=jnp.float32)
    x1 = -2.0 + jax.random.normal(kx1, (batch // 2, n_features), dtype=jnp.float32)
    x = jnp.concatenate([x0, x1], axis=0)

    # Deterministic parameter init (PyTorch nn.Linear shapes: W (out, in), b (out,)).
    bound1 = 1.0 / (n_features ** 0.5)
    bound2 = 1.0 / (n_hidden ** 0.5)
    w1 = jax.random.uniform(kw1, (n_hidden, n_features), jnp.float32, -bound1, bound1)
    b1 = jax.random.uniform(kb1, (n_hidden,), jnp.float32, -bound1, bound1)
    w2 = jax.random.uniform(kw2, (n_output, n_hidden), jnp.float32, -bound2, bound2)
    b2 = jax.random.uniform(kb2, (n_output,), jnp.float32, -bound2, bound2)

    # One-time layout glue (off the per-call dispatch path).
    w1_p, b1_p, w2_p, b2_p = prepare_params(w1, b1, w2, b2)

    out = net_forward(x, w1_p, b1_p, w2_p, b2_p)
    out = jax.block_until_ready(out)

    ref = net_forward_ref(x, w1, b1, w2, b2)
    assert out.shape == (batch, n_output)
    assert jnp.allclose(out, ref, atol=1e-5, rtol=1e-5), "mismatch vs reference"

    print("KERNEL_OK")
</pallas_src>

<mosaic_0001>
module attributes {stable_mosaic.version = 11 : i64} {
  func.func @_mlp_kernel(%arg0: memref<200x2xf32, #tpu.memory_space<vmem>>, %arg1: memref<2x128xf32, #tpu.memory_space<vmem>>, %arg2: memref<1x128xf32, #tpu.memory_space<vmem>>, %arg3: memref<128x2xf32, #tpu.memory_space<vmem>>, %arg4: memref<1x2xf32, #tpu.memory_space<vmem>>, %arg5: memref<200x2xf32, #tpu.memory_space<vmem>>) attributes {dimension_semantics = [], scalar_prefetch = 0 : i64, scratch_operands = 0 : i64, tpu.core_type = #tpu.core_type<tc>} {
    %c0 = arith.constant 0 : index
    %c0_0 = arith.constant 0 : index
    %0 = vector.load %arg0[%c0, %c0_0] : memref<200x2xf32, #tpu.memory_space<vmem>>, vector<200x2xf32>
    %c0_1 = arith.constant 0 : index
    %c0_2 = arith.constant 0 : index
    %1 = vector.load %arg1[%c0_1, %c0_2] : memref<2x128xf32, #tpu.memory_space<vmem>>, vector<2x128xf32>
    %2 = vector.extract_strided_slice %0 {offsets = [0, 0], sizes = [200, 1], strides = [1, 1]} : vector<200x2xf32> to vector<200x1xf32>
    %3 = vector.extract_strided_slice %1 {offsets = [0, 0], sizes = [1, 128], strides = [1, 1]} : vector<2x128xf32> to vector<1x128xf32>
    %4 = vector.broadcast %2 : vector<200x1xf32> to vector<200x128xf32>
    %5 = vector.broadcast %3 : vector<1x128xf32> to vector<200x128xf32>
    %6 = arith.mulf %4, %5 : vector<200x128xf32>
    %7 = vector.extract_strided_slice %0 {offsets = [0, 1], sizes = [200, 1], strides = [1, 1]} : vector<200x2xf32> to vector<200x1xf32>
    %8 = vector.extract_strided_slice %1 {offsets = [1, 0], sizes = [1, 128], strides = [1, 1]} : vector<2x128xf32> to vector<1x128xf32>
    %9 = vector.broadcast %7 : vector<200x1xf32> to vector<200x128xf32>
    %10 = vector.broadcast %8 : vector<1x128xf32> to vector<200x128xf32>
    %11 = arith.mulf %9, %10 : vector<200x128xf32>
    %12 = arith.addf %6, %11 : vector<200x128xf32>
    %c0_3 = arith.constant 0 : index
    %c0_4 = arith.constant 0 : index
    %13 = vector.load %arg2[%c0_3, %c0_4] : memref<1x128xf32, #tpu.memory_space<vmem>>, vector<1x128xf32>
    %14 = vector.broadcast %13 : vector<1x128xf32> to vector<200x128xf32>
    %15 = arith.addf %12, %14 : vector<200x128xf32>
    %cst = arith.constant 0.000000e+00 : f32
    %16 = vector.broadcast %cst : f32 to vector<200x128xf32>
    %17 = arith.maximumf %15, %16 : vector<200x128xf32>
    %c0_5 = arith.constant 0 : index
    %c0_6 = arith.constant 0 : index
    %18 = vector.load %arg3[%c0_5, %c0_6] : memref<128x2xf32, #tpu.memory_space<vmem>>, vector<128x2xf32>
    %cst_7 = arith.constant dense<0.000000e+00> : vector<200x2xf32>
    %19 = tpu.matmul %17, %18, %cst_7 {dimension_numbers = #tpu.dot_dimension_numbers<[1], [0], [0], [1], [0, 0, 1, 1], [], []>} : vector<200x128xf32>, vector<128x2xf32>, vector<200x2xf32> -> vector<200x2xf32>
    %c0_8 = arith.constant 0 : index
    %c0_9 = arith.constant 0 : index
    %20 = vector.load %arg4[%c0_8, %c0_9] : memref<1x2xf32, #tpu.memory_space<vmem>>, vector<1x2xf32>
    %21 = vector.broadcast %20 : vector<1x2xf32> to vector<200x2xf32>
    %22 = arith.addf %19, %21 : vector<200x2xf32>
    %c0_10 = arith.constant 0 : index
    %c0_11 = arith.constant 0 : index
    %23 = vector.load %arg5[%c0_10, %c0_11] : memref<200x2xf32, #tpu.memory_space<vmem>>, vector<200x2xf32>
    tpu.vector_store %arg5[%c0_10, %c0_11], %22 {strides = array<i32>} : memref<200x2xf32, #tpu.memory_space<vmem>>, vector<200x2xf32>,
    return
  }
}

</mosaic_0001>

<bundles_post_ra>
// kernel: net_forward.1
= control target key start
LH: loop header
LB: loop body
LE: loop exit
PB: predicated region body
PF: predicated region fallthrough
CT: control target
= control target key end

     0   :  { %v868_v0 = vmov 0   ;;  %v869_v4 = vmov 0.0   ;;  %v870_v5 = vmov 1   ;;  %vm871_vm0 = vmmov 0   ;;  %s1385_s0 = inlined_call_operand.vmem [shape: f32[200,2], index: 0, kind: input, shape index: {}]   ;;  %s1386_s3 = inlined_call_operand.vmem [shape: f32[128,2], index: 3, kind: input, shape index: {}]   ;;  %s1387_s1 = inlined_call_operand.vmem [shape: f32[2,128], index: 1, kind: input, shape index: {}]   ;;  %s1388_s2 = inlined_call_operand.vmem [shape: f32[1,128], index: 2, kind: input, shape index: {}]   ;;  %s1389_s4 = inlined_call_operand.vmem [shape: f32[1,2], index: 4, kind: input, shape index: {}]   ;;  %s1390_s5 = inlined_call_operand.vmem [shape: f32[200,2], index: 5, kind: output, shape index: {}]  }
   0x1   :  { %842 = vset.pattern.permute.xlu1 %v868_v0  ;;  %840 = vset.pattern.permute.xlu0 %v868_v0  ;;  %v21_v1 = vld [vmem:[%s1385_s0 + $0x8] sm:$0xff]  ;;  %v20_v2 = vld [vmem:[%s1385_s0] sm:$0xff]  ;;  %v426_v6 = vld [vmem:[%s1386_s3 + $0x78] sm:$0xff]  ;;  %v171_v42 = vlaneseq  ;;  %vm624_vm1 = vcmask 15360  }
   0x2   :  { %53 = vperm.xlu1 %842, %v21_v1   ;;  %48 = vperm.xlu0 %840, %v20_v2   ;;  %v33_v3 = vld [vmem:[%s1385_s0 + $0x68] sm:$0xff]  ;;  %v425_v7 = vld [vmem:[%s1386_s3 + $0x70] sm:$0xff]  ;;  %v930_v9 = vld [vmem:[%s1385_s0 + $0x18] sm:$0xff] }
   0x3   :  { %697 = vmatprep.subr.mxu0 %v869_v4  ;;  %804 = vmatprep.subr.mxu1 %v869_v4  ;;  %v424_v8 = vld [vmem:[%s1386_s3 + $0x68] sm:$0xff]  ;;  %v22_v10 = vld [vmem:[%s1385_s0 + $0x10] sm:$0xff]  ;;  %v423_v11 = vld [vmem:[%s1386_s3 + $0x60] sm:$0xff]  ;;  %v172_v43 = vshrl.u32 %v171_v42, 7 }
   0x4   :  { %698 = vmatpush3.msra.mxu0 %v426_v6  ;;  %820 = vmatpush3.msra.mxu1 %v426_v6  ;;  %v946_v12 = vld [vmem:[%s1385_s0 + $0x28] sm:$0xff]  ;;  %v422_v13 = vld [vmem:[%s1386_s3 + $0x58] sm:$0xff]  ;;  %v421_v14 = vld [vmem:[%s1386_s3 + $0x50] sm:$0xff] }
   0x5   :  { %699 = vmatprep.subr.mxu0 %v869_v4  ;;  %805 = vmatprep.subr.mxu1 %v869_v4  ;;  %v962_v15 = vld [vmem:[%s1385_s0 + $0x38] sm:$0xff]  ;;  %v420_v16 = vld [vmem:[%s1386_s3 + $0x48] sm:$0xff]  ;;  %v34_v17 = vld [vmem:[%s1385_s0 + $0x70] sm:$0xff]  ;;  %v173_v44 = vsub.s32 0, %v172_v43  ;;  %v302_v46 = vsub.s32 1, %v172_v43 }
   0x6   :  { %113 = vperm.xlu1 %842, %v33_v3   ;;  %841 = vset.pattern.permute.xlu0 %v870_v5  ;;  %v977_v18 = vld [vmem:[%s1385_s0 + $0x48] sm:$0xff]  ;;  %v419_v19 = vld [vmem:[%s1386_s3 + $0x40] sm:$0xff]  ;;  %v35_v20 = vld [vmem:[%s1385_s0 + $0x78] sm:$0xff] }
   0x7   :  { %201 = vperm.xlu0 %841, %v20_v2   ;;  %700 = vmatpush3.msra.mxu0 %v425_v7  ;;  %v418_v21 = vld [vmem:[%s1386_s3 + $0x38] sm:$0xff]  ;;  %v417_v23 = vld [vmem:[%s1386_s3 + $0x30] sm:$0xff]  ;;  %v416_v24 = vld [vmem:[%s1386_s3 + $0x28] sm:$0xff] }
   0x8   :  { %701 = vmatprep.subr.mxu0 %v869_v4  ;;  %821 = vmatpush3.msra.mxu1 %v425_v7  ;;  %v994_v22 = vld [vmem:[%s1385_s0 + $0x58] sm:$0xff]  ;;  %v415_v25 = vld [vmem:[%s1386_s3 + $0x20] sm:$0xff]  ;;  %v413_v29 = vld [vmem:[%s1386_s3 + $0x10] sm:$0xff] }
   0x9   :  { %702 = vmatpush3.msra.mxu0 %v424_v8  ;;  %806 = vmatprep.subr.mxu1 %v869_v4  ;;  %v24_v26 = vld [vmem:[%s1385_s0 + $0x20] sm:$0xff]  ;;  %v414_v27 = vld [vmem:[%s1386_s3 + $0x18] sm:$0xff]  ;;  %v412_v30 = vld [vmem:[%s1386_s3 + $0x8] sm:$0xff] }
   0xa   :  { %843 = vset.pattern.permute.xlu1 %v870_v5  ;;  %703 = vmatprep.subr.mxu0 %v869_v4  ;;  %v36_v28 = vld [vmem:[%s1385_s0 + $0x80] sm:$0xff]  ;;  %v38_v32 = vld [vmem:[%s1385_s0 + $0x90] sm:$0xff]  ;;  %v37_v33 = vld [vmem:[%s1385_s0 + $0x88] sm:$0xff] }
   0xb   :  { %205 = vperm.xlu1 %843, %v21_v1   ;;  %253 = vperm.xlu0 %841, %v33_v3   ;;  %v411_v31 = vld [vmem:[%s1386_s3] sm:$0xff]  ;;  %v26_v35 = vld [vmem:[%s1385_s0 + $0x30] sm:$0xff]  ;;  %v39_v38 = vld [vmem:[%s1385_s0 + $0x98] sm:$0xff] }
   0xc   :  { %704 = vmatpush3.msra.mxu0 %v423_v11  ;;  %822 = vmatpush3.msra.mxu1 %v424_v8  ;;  %v40_v34 = vld [vmem:[%s1385_s0 + $0xa0] sm:$0xff]  ;;  %v42_v36 = vld [vmem:[%s1385_s0 + $0xb0] sm:$0xff]  ;;  %v41_v40 = vld [vmem:[%s1385_s0 + $0xa8] sm:$0xff] }
   0xd   :  { %705 = vmatprep.subr.mxu0 %v869_v4  ;;  %807 = vmatprep.subr.mxu1 %v869_v4  ;;  %v1078_v37 = vld [vmem:[%s1385_s0 + $0xc0] sm:$0xff]  ;;  %v30_v41 = vld [vmem:[%s1385_s0 + $0x50] sm:$0xff]  ;;  %v43_v45 = vld [vmem:[%s1385_s0 + $0xb8] sm:$0xff] }
   0xe   :  { %706 = vmatpush3.msra.mxu0 %v422_v13  ;;  %823 = vmatpush3.msra.mxu1 %v423_v11  ;;  %v28_v39 = vld [vmem:[%s1385_s0 + $0x40] sm:$0xff] }
   0xf   :  { %844 = vset.pattern.permute.xlu1 %v868_v0  ;;  %213 = vperm.xlu0 %841, %v930_v9   ;;  %v45_v47 = vld [vmem:[%s1387_s1] sm:$0x3] }
  0x10   :  { %58 = vperm.xlu1 %844, %v22_v10   ;;  %707 = vmatprep.subr.mxu0 %v869_v4  ;;  %v1109_v50 = vrot.slane %v45_v47, %v173_v44  ;;  %v1111_v51 = vrot.slane %v45_v47, %v302_v46  ;;  %v1119_v56 = vld [vmem:[%s1388_s2] ss:$0 sm:$0xff] }
  0x11   :  { %708 = vmatpush3.msra.mxu0 %v421_v14  ;;  %808 = vmatprep.subr.mxu1 %v869_v4  ;;  %v32_v58 = vld [vmem:[%s1385_s0 + $0x60] sm:$0xff] }
  0x12   :  { %709 = vmatprep.subr.mxu0 %v869_v4  ;;  %824 = vmatpush3.msra.mxu1 %v422_v13 }
  0x13   :  { %221 = vperm.xlu0 %841, %v946_v12   ;;  %710 = vmatpush3.msra.mxu0 %v420_v16 }
  0x14   :  { %845 = vset.pattern.permute.xlu1 %v870_v5  ;;  %809 = vmatprep.subr.mxu1 %v869_v4 }
  0x15   :  { %209 = vperm.xlu1 %845, %v22_v10   ;;  %711 = vmatprep.subr.mxu0 %v869_v4 }
  0x16   :  { %825 = vmatpush3.msra.mxu1 %v421_v14  ;;  %712 = vmatpush3.msra.mxu0 %v419_v19 }
  0x17   :  { %229 = vperm.xlu0 %841, %v962_v15   ;;  %810 = vmatprep.subr.mxu1 %v869_v4 }
  0x18   :  { %713 = vmatprep.subr.mxu0 %v869_v4  ;;  %826 = vmatpush3.msra.mxu1 %v420_v16 }
  0x19   :  { %257 = vperm.xlu1 %845, %v34_v17   ;;  %714 = vmatpush3.msra.mxu0 %v418_v21 }
  0x1a   :  { %811 = vmatprep.subr.mxu1 %v869_v4  ;;  %715 = vmatprep.subr.mxu0 %v869_v4 }
  0x1b   :  { %237 = vperm.xlu0 %841, %v977_v18   ;;  %827 = vmatpush3.msra.mxu1 %v419_v19 }
  0x1c   :  { %716 = vmatpush3.msra.mxu0 %v417_v23  ;;  %812 = vmatprep.subr.mxu1 %v869_v4 }
  0x1d   :  { %846 = vset.pattern.permute.xlu1 %v868_v0  ;;  %717 = vmatprep.subr.mxu0 %v869_v4 }
  0x1e   :  { %123 = vperm.xlu1 %846, %v35_v20   ;;  %828 = vmatpush3.msra.mxu1 %v418_v21 }
  0x1f   :  { %245 = vperm.xlu0 %841, %v994_v22   ;;  %718 = vmatpush3.msra.mxu0 %v416_v24 }
  0x20   :  { %813 = vmatprep.subr.mxu1 %v869_v4  ;;  %719 = vmatprep.subr.mxu0 %v869_v4 }
  0x21   :  { %829 = vmatpush3.msra.mxu1 %v417_v23  ;;  %720 = vmatpush3.msra.mxu0 %v415_v25 }
  0x22   :  { %847 = vset.pattern.permute.xlu1 %v870_v5  ;;  %814 = vmatprep.subr.mxu1 %v869_v4 }
  0x23   :  { %261 = vperm.xlu1 %847, %v35_v20   ;;  %863 = vset.pattern.permute.xlu0 %v868_v0 }
  0x24   :  { %118 = vperm.xlu0 %863, %v34_v17   ;;  %721 = vmatprep.subr.mxu0 %v869_v4 }
  0x25   :  { %830 = vmatpush3.msra.mxu1 %v416_v24  ;;  %722 = vmatpush3.msra.mxu0 %v414_v27 }
  0x26   :  { %815 = vmatprep.subr.mxu1 %v869_v4  ;;  %723 = vmatprep.subr.mxu0 %v869_v4 }
  0x27   :  { %848 = vset.pattern.permute.xlu1 %v868_v0  ;;  %831 = vmatpush3.msra.mxu1 %v415_v25 }
  0x28   :  { %68 = vperm.xlu1 %848, %v24_v26   ;;  %63 = vperm.xlu0 %863, %v930_v9  }
  0x29   :  { %724 = vmatpush3.msra.mxu0 %v413_v29  ;;  %816 = vmatprep.subr.mxu1 %v869_v4 }
  0x2a   :  { %725 = vmatprep.subr.mxu0 %v869_v4  ;;  %832 = vmatpush3.msra.mxu1 %v414_v27 }
  0x2b   :  { %726 = vmatpush3.msra.mxu0 %v412_v30  ;;  %817 = vmatprep.subr.mxu1 %v869_v4 }
  0x2c   :  { %849 = vset.pattern.permute.xlu1 %v870_v5  ;;  %128 = vperm.xlu0 %863, %v36_v28  }
  0x2d   :  { %217 = vperm.xlu1 %849, %v24_v26   ;;  %727 = vmatprep.subr.mxu0 %v869_v4 }
  0x2e   :  { %833 = vmatpush3.msra.mxu1 %v413_v29  ;;  %728 = vmatpush3.msra.mxu0 %v411_v31 }
  0x2f   :  { %729 = vmatprep.mubr.msk.f32.mxu0 %vm871_vm0, %v869_v4  ;;  %818 = vmatprep.subr.mxu1 %v869_v4 }
  0x30   :  { %73 = vperm.xlu0 %863, %v946_v12   ;;  %834 = vmatpush3.msra.mxu1 %v412_v30 }
  0x31   :  { %265 = vperm.xlu1 %849, %v36_v28   ;;  %819 = vmatprep.subr.mxu1 %v869_v4 }
  0x32   :  { %835 = vmatpush3.msra.mxu1 %v411_v31  ;;  %768 = vmatprep.mubr.msk.f32.mxu1 %vm871_vm0, %v869_v4 }
  0x34   :  { %138 = vperm.xlu0 %863, %v38_v32  }
  0x35   :  { %850 = vset.pattern.permute.xlu1 %v868_v0 }
  0x36   :  { %133 = vperm.xlu1 %850, %v37_v33  }
  0x38   :  { %83 = vperm.xlu0 %863, %v962_v15  }
  0x3a   :  { %851 = vset.pattern.permute.xlu1 %v870_v5 }
  0x3b   :  { %269 = vperm.xlu1 %851, %v37_v33  }
  0x3c   :  { %148 = vperm.xlu0 %863, %v40_v34  }
  0x3f   :  { %852 = vset.pattern.permute.xlu1 %v868_v0 }
  0x40   :  { %78 = vperm.xlu1 %852, %v26_v35   ;;  %93 = vperm.xlu0 %863, %v977_v18  }
  0x44   :  { %853 = vset.pattern.permute.xlu1 %v870_v5  ;;  %158 = vperm.xlu0 %863, %v42_v36  }
  0x45   :  { %225 = vperm.xlu1 %853, %v26_v35  }
  0x48   :  { %103 = vperm.xlu0 %863, %v994_v22  }
  0x49   :  { %273 = vperm.xlu1 %853, %v38_v32  }
  0x4c   :  { %168 = vperm.xlu0 %863, %v1078_v37  }
  0x4d   :  { %854 = vset.pattern.permute.xlu1 %v868_v0 }
  0x4e   :  { %143 = vperm.xlu1 %854, %v39_v38  }
  0x50   :  { %867 = vset.pattern.permute.xlu0 %v870_v5 }
  0x52   :  { %855 = vset.pattern.permute.xlu1 %v870_v5 }
  0x53   :  { %277 = vperm.xlu1 %855, %v39_v38  }
  0x57   :  { %856 = vset.pattern.permute.xlu1 %v868_v0 }
  0x58   :  { %88 = vperm.xlu1 %856, %v28_v39  }
  0x5c   :  { %857 = vset.pattern.permute.xlu1 %v870_v5 }
  0x5d   :  { %233 = vperm.xlu1 %857, %v28_v39  }
  0x61   :  { %281 = vperm.xlu1 %857, %v40_v34  }
  0x65   :  { %858 = vset.pattern.permute.xlu1 %v868_v0 }
  0x66   :  { %153 = vperm.xlu1 %858, %v41_v40  }
  0x6a   :  { %859 = vset.pattern.permute.xlu1 %v870_v5 }
  0x6b   :  { %285 = vperm.xlu1 %859, %v41_v40  }
  0x6f   :  { %860 = vset.pattern.permute.xlu1 %v868_v0 }
  0x70   :  { %98 = vperm.xlu1 %860, %v30_v41  }
  0x74   :  { %861 = vset.pattern.permute.xlu1 %v870_v5 }
  0x75   :  { %241 = vperm.xlu1 %861, %v30_v41  }
  0x79   :  { %289 = vperm.xlu1 %861, %v42_v36  }
  0x7d   :  { %862 = vset.pattern.permute.xlu1 %v868_v0  ;;  %v54_v48 = vpop.permute.xlu1 %53  ;;  %v49_v49 = vpop.permute.xlu0 %48 }
  0x7e   :  { %163 = vperm.xlu1 %862, %v43_v45   ;;  %v175_v52 = vmul.f32 %v1109_v50, %v49_v49  ;;  %v176_v59 = vmul.f32 %v1109_v50, %v54_v48 }
  0x81   :  { %v114_v53 = vpop.permute.xlu1 %113 }
  0x82   :  { %864 = vset.pattern.permute.xlu1 %v870_v5  ;;  %v202_v54 = vpop.permute.xlu0 %201  ;;  %v188_v62 = vmul.f32 %v1109_v50, %v114_v53 }
  0x83   :  { %v304_v55 = vmul.f32 %v1111_v51, %v202_v54  ;;  %293 = vperm.xlu1 %864, %v43_v45  }
  0x85   :  { %v329_v57 = vadd.f32 %v304_v55, %v175_v52 }
  0x86   :  { %v206_v60 = vpop.permute.xlu1 %205  ;;  %v254_v61 = vpop.permute.xlu0 %253 }
  0x87   :  { %v305_v63 = vmul.f32 %v1111_v51, %v206_v60  ;;  %v317_v1 = vmul.f32 %v1111_v51, %v254_v61  ;;  %865 = vset.pattern.permute.xlu1 %v868_v0  ;;  %v361_v2 = vadd.f32 %v1119_v56, %v329_v57 }
  0x88   :  { %108 = vperm.xlu1 %865, %v32_v58  }
  0x89   :  { %v330_v3 = vadd.f32 %v305_v63, %v176_v59  ;;  %v342_v6 = vadd.f32 %v317_v1, %v188_v62  ;;  %v386_v7 = vmax.f32 %v361_v2, 0.0 }
  0x8a   :  { %v214_v8 = vpop.permute.xlu0 %213 }
  0x8b   :  { %v59_v9 = vpop.permute.xlu1 %58  ;;  %730 = vmatmul.mubr.f32.vlgmr.msra.gmra.mxu0 %v386_v7  ;;  %v362_v10 = vadd.f32 %v1119_v56, %v330_v3  ;;  %v374_v11 = vadd.f32 %v1119_v56, %v342_v6  ;;  %v307_v30 = vmul.f32 %v1111_v51, %v214_v8 }
  0x8c   :  { %866 = vset.pattern.permute.xlu1 %v870_v5  ;;  %732 = vmatprep.mubr.msk.f32.mxu0 %vm871_vm0, %v869_v4  ;;  %v177_v15 = vmul.f32 %v1109_v50, %v59_v9 }
  0x8d   :  { %249 = vperm.xlu1 %866, %v32_v58   ;;  %v387_v0 = vmax.f32 %v362_v10, 0.0  ;;  %v399_v12 = vmax.f32 %v374_v11, 0.0 }
  0x8e   :  { %v222_v13 = vpop.permute.xlu0 %221 }
  0x8f   :  { %733 = vmatmul.mubr.f32.gmra.mxu0 %v387_v0  ;;  %769 = vmatmul.mubr.f32.vlgmr.msra.gmra.mxu1 %v399_v12  ;;  %v309_v45 = vmul.f32 %v1111_v51, %v222_v13 }
  0x90   :  { %v210_v14 = vpop.permute.xlu1 %209  ;;  %735 = vmatprep.mubr.msk.f32.mxu0 %vm871_vm0, %v869_v4  ;;  %771 = vmatprep.mubr.msk.f32.mxu1 %vm871_vm0, %v869_v4 }
  0x91   :  { %v306_v5 = vmul.f32 %v1111_v51, %v210_v14  ;;  %297 = vperm.xlu1 %866, %v1078_v37  }
  0x92   :  { %v1142_v16 = vpop.permute.xlu0 %229 }
  0x93   :  { %v331_v17 = vadd.f32 %v306_v5, %v177_v15  ;;  %v311_v12 = vmul.f32 %v1111_v51, %v1142_v16 }
  0x94   :  { %v258_v18 = vpop.permute.xlu1 %257 }
  0x95   :  { %v363_v19 = vadd.f32 %v1119_v56, %v331_v17  ;;  %v318_v27 = vmul.f32 %v1111_v51, %v258_v18 }
  0x96   :  { %v1145_v20 = vpop.permute.xlu0 %237 }
  0x97   :  { %v388_v21 = vmax.f32 %v363_v19, 0.0 }
  0x99   :  { %v124_v22 = vpop.permute.xlu1 %123  ;;  %736 = vmatmul.mubr.f32.gmra.mxu0 %v388_v21 }
  0x9a   :  { %v1147_v23 = vpop.permute.xlu0 %245  ;;  %738 = vmatprep.mubr.msk.f32.mxu0 %vm871_vm0, %v869_v4  ;;  %v190_v28 = vmul.f32 %v1109_v50, %v124_v22 }
  0x9e   :  { %v262_v24 = vpop.permute.xlu1 %261 }
  0x9f   :  { %v319_v25 = vmul.f32 %v1111_v51, %v262_v24  ;;  %v119_v26 = vpop.permute.xlu0 %118 }
  0xa0   :  { %v189_v29 = vmul.f32 %v1109_v50, %v119_v26 }
  0xa1   :  { %v344_v31 = vadd.f32 %v319_v25, %v190_v28 }
  0xa2   :  { %v343_v32 = vadd.f32 %v318_v27, %v189_v29 }
  0xa3   :  { %v69_v33 = vpop.permute.xlu1 %68  ;;  %v64_v34 = vpop.permute.xlu0 %63  ;;  %v376_v39 = vadd.f32 %v1119_v56, %v344_v31 }
  0xa4   :  { %v178_v35 = vmul.f32 %v1109_v50, %v64_v34  ;;  %v375_v36 = vadd.f32 %v1119_v56, %v343_v32  ;;  %v179_v43 = vmul.f32 %v1109_v50, %v69_v33 }
  0xa5   :  { %v401_v46 = vmax.f32 %v376_v39, 0.0 }
  0xa6   :  { %v332_v37 = vadd.f32 %v307_v30, %v178_v35  ;;  %v400_v38 = vmax.f32 %v375_v36, 0.0 }
  0xa7   :  { %v129_v40 = vpop.permute.xlu0 %128 }
  0xa8   :  { %v218_v41 = vpop.permute.xlu1 %217  ;;  %772 = vmatmul.mubr.f32.gmra.mxu1 %v400_v38  ;;  %v364_v42 = vadd.f32 %v1119_v56, %v332_v37  ;;  %v191_v49 = vmul.f32 %v1109_v50, %v129_v40 }
  0xa9   :  { %v308_v44 = vmul.f32 %v1111_v51, %v218_v41  ;;  %774 = vmatprep.mubr.msk.f32.mxu1 %vm871_vm0, %v869_v4  ;;  %v313_v41 = vmul.f32 %v1111_v51, %v1145_v20 }
  0xaa   :  { %v389_v47 = vmax.f32 %v364_v42, 0.0 }
  0xab   :  { %v333_v48 = vadd.f32 %v308_v44, %v179_v43  ;;  %v74_v52 = vpop.permute.xlu0 %73 }
  0xac   :  { %v266_v53 = vpop.permute.xlu1 %265  ;;  %775 = vmatmul.mubr.f32.gmra.mxu1 %v401_v46  ;;  %739 = vmatmul.mubr.f32.gmra.mxu0 %v389_v47  ;;  %v180_v54 = vmul.f32 %v1109_v50, %v74_v52 }
  0xad   :  { %v320_v55 = vmul.f32 %v1111_v51, %v266_v53  ;;  %741 = vmatprep.mubr.msk.f32.mxu0 %vm871_vm0, %v869_v4  ;;  %v365_v57 = vadd.f32 %v1119_v56, %v333_v48  ;;  %777 = vmatprep.mubr.msk.f32.mxu1 %vm871_vm0, %v869_v4 }
  0xae   :  { %v334_v58 = vadd.f32 %v309_v45, %v180_v54 }
  0xaf   :  { %v345_v59 = vadd.f32 %v320_v55, %v191_v49  ;;  %v390_v60 = vmax.f32 %v365_v57, 0.0  ;;  %v139_v3 = vpop.permute.xlu0 %138 }
  0xb0   :  { %v366_v61 = vadd.f32 %v1119_v56, %v334_v58  ;;  %v193_v19 = vmul.f32 %v1109_v50, %v139_v3 }
  0xb1   :  { %v134_v62 = vpop.permute.xlu1 %133  ;;  %742 = vmatmul.mubr.f32.gmra.mxu0 %v390_v60  ;;  %v377_v63 = vadd.f32 %v1119_v56, %v345_v59 }
  0xb2   :  { %744 = vmatprep.mubr.msk.f32.mxu0 %vm871_vm0, %v869_v4  ;;  %v391_v1 = vmax.f32 %v366_v61, 0.0  ;;  %v192_v7 = vmul.f32 %v1109_v50, %v134_v62 }
  0xb3   :  { %v402_v2 = vmax.f32 %v377_v63, 0.0  ;;  %v84_v0 = vpop.permute.xlu0 %83 }
  0xb4   :  { %v182_v13 = vmul.f32 %v1109_v50, %v84_v0 }
  0xb5   :  { %778 = vmatmul.mubr.f32.gmra.mxu1 %v402_v2  ;;  %745 = vmatmul.mubr.f32.gmra.mxu0 %v391_v1 }
  0xb6   :  { %v270_v6 = vpop.permute.xlu1 %269  ;;  %780 = vmatprep.mubr.msk.f32.mxu1 %vm871_vm0, %v869_v4  ;;  %747 = vmatprep.mubr.msk.f32.mxu0 %vm871_vm0, %v869_v4  ;;  %v336_v5 = vadd.f32 %v311_v12, %v182_v13 }
  0xb7   :  { %v321_v8 = vmul.f32 %v1111_v51, %v270_v6  ;;  %v149_v35 = vpop.permute.xlu0 %148 }
  0xb8   :  { %v368_v25 = vadd.f32 %v1119_v56, %v336_v5  ;;  %v195_v46 = vmul.f32 %v1109_v50, %v149_v35 }
  0xb9   :  { %v346_v9 = vadd.f32 %v321_v8, %v192_v7 }
  0xba   :  { %v393_v30 = vmax.f32 %v368_v25, 0.0 }
  0xbb   :  { %v79_v10 = vpop.permute.xlu1 %78  ;;  %v378_v11 = vadd.f32 %v1119_v56, %v346_v9  ;;  %v94_v40 = vpop.permute.xlu0 %93  ;;  %v315_v9 = vmul.f32 %v1111_v51, %v1147_v23 }
  0xbc   :  { %v181_v17 = vmul.f32 %v1109_v50, %v79_v10  ;;  %v184_v42 = vmul.f32 %v1109_v50, %v94_v40 }
  0xbd   :  { %v403_v14 = vmax.f32 %v378_v11, 0.0 }
  0xbe   :  { %v338_v47 = vadd.f32 %v313_v41, %v184_v42 }
  0xbf   :  { %781 = vmatmul.mubr.f32.gmra.mxu1 %v403_v14  ;;  %v159_v61 = vpop.permute.xlu0 %158 }
  0xc0   :  { %v226_v15 = vpop.permute.xlu1 %225  ;;  %783 = vmatprep.mubr.msk.f32.mxu1 %vm871_vm0, %v869_v4  ;;  %v370_v55 = vadd.f32 %v1119_v56, %v338_v47  ;;  %v197_v5 = vmul.f32 %v1109_v50, %v159_v61 }
  0xc1   :  { %v310_v18 = vmul.f32 %v1111_v51, %v226_v15 }
  0xc2   :  { %v395_v59 = vmax.f32 %v370_v55, 0.0 }
  0xc3   :  { %v335_v21 = vadd.f32 %v310_v18, %v181_v17  ;;  %v104_v7 = vpop.permute.xlu0 %103 }
  0xc4   :  { %v274_v22 = vpop.permute.xlu1 %273  ;;  %v186_v10 = vmul.f32 %v1109_v50, %v104_v7 }
  0xc5   :  { %v322_v24 = vmul.f32 %v1111_v51, %v274_v22  ;;  %v367_v16 = vadd.f32 %v1119_v56, %v335_v21 }
  0xc6   :  { %v340_v13 = vadd.f32 %v315_v9, %v186_v10 }
  0xc7   :  { %v347_v26 = vadd.f32 %v322_v24, %v193_v19  ;;  %v392_v27 = vmax.f32 %v367_v16, 0.0 }
  0xc8   :  { %v372_v21 = vadd.f32 %v1119_v56, %v340_v13 }
  0xc9   :  { %v144_v28 = vpop.permute.xlu1 %143  ;;  %748 = vmatmul.mubr.f32.gmra.mxu0 %v392_v27  ;;  %v379_v29 = vadd.f32 %v1119_v56, %v347_v26 }
  0xca   :  { %750 = vmatprep.mubr.msk.f32.mxu0 %vm871_vm0, %v869_v4  ;;  %v194_v33 = vmul.f32 %v1109_v50, %v144_v28  ;;  %v397_v16 = vmax.f32 %v372_v21, 0.0 }
  0xcb   :  { %v404_v31 = vmax.f32 %v379_v29, 0.0 }
  0xcd   :  { %784 = vmatmul.mubr.f32.gmra.mxu1 %v404_v31  ;;  %751 = vmatmul.mubr.f32.gmra.mxu0 %v393_v30 }
  0xce   :  { %v278_v32 = vpop.permute.xlu1 %277  ;;  %786 = vmatprep.mubr.msk.f32.mxu1 %vm871_vm0, %v869_v4  ;;  %753 = vmatprep.mubr.msk.f32.mxu0 %vm871_vm0, %v869_v4 }
  0xcf   :  { %v323_v34 = vmul.f32 %v1111_v51, %v278_v32 }
  0xd1   :  { %v348_v36 = vadd.f32 %v323_v34, %v194_v33 }
  0xd3   :  { %v89_v37 = vpop.permute.xlu1 %88  ;;  %v380_v38 = vadd.f32 %v1119_v56, %v348_v36  ;;  %v169_v36 = vpop.permute.xlu0 %168 }
  0xd4   :  { %v183_v44 = vmul.f32 %v1109_v50, %v89_v37 }
  0xd5   :  { %v405_v39 = vmax.f32 %v380_v38, 0.0 }
  0xd7   :  { %787 = vmatmul.mubr.f32.gmra.mxu1 %v405_v39  ;;  %v199_v39 = vmul.f32 %v1109_v50, %v169_v36 }
  0xd8   :  { %v234_v43 = vpop.permute.xlu1 %233  ;;  %789 = vmatprep.mubr.msk.f32.mxu1 %vm871_vm0, %v869_v4 }
  0xd9   :  { %v312_v45 = vmul.f32 %v1111_v51, %v234_v43 }
  0xdb   :  { %v337_v48 = vadd.f32 %v312_v45, %v183_v44 }
  0xdc   :  { %v282_v49 = vpop.permute.xlu1 %281 }
  0xdd   :  { %v324_v52 = vmul.f32 %v1111_v51, %v282_v49  ;;  %v369_v20 = vadd.f32 %v1119_v56, %v337_v48 }
  0xdf   :  { %v349_v53 = vadd.f32 %v324_v52, %v195_v46  ;;  %v394_v54 = vmax.f32 %v369_v20, 0.0 }
  0xe1   :  { %v154_v57 = vpop.permute.xlu1 %153  ;;  %754 = vmatmul.mubr.f32.gmra.mxu0 %v394_v54  ;;  %v381_v58 = vadd.f32 %v1119_v56, %v349_v53 }
  0xe2   :  { %756 = vmatprep.mubr.msk.f32.mxu0 %vm871_vm0, %v869_v4  ;;  %v196_v63 = vmul.f32 %v1109_v50, %v154_v57 }
  0xe3   :  { %v406_v60 = vmax.f32 %v381_v58, 0.0 }
  0xe5   :  { %757 = vmatmul.mubr.f32.gmra.mxu0 %v395_v59  ;;  %790 = vmatmul.mubr.f32.gmra.mxu1 %v406_v60 }
  0xe6   :  { %v286_v62 = vpop.permute.xlu1 %285  ;;  %792 = vmatprep.mubr.msk.f32.mxu1 %vm871_vm0, %v869_v4  ;;  %759 = vmatprep.mubr.msk.f32.mxu0 %vm871_vm0, %v869_v4 }
  0xe7   :  { %v325_v1 = vmul.f32 %v1111_v51, %v286_v62 }
  0xe9   :  { %v350_v2 = vadd.f32 %v325_v1, %v196_v63 }
  0xeb   :  { %v99_v3 = vpop.permute.xlu1 %98  ;;  %v382_v6 = vadd.f32 %v1119_v56, %v350_v2 }
  0xec   :  { %v185_v0 = vmul.f32 %v1109_v50, %v99_v3 }
  0xed   :  { %v407_v8 = vmax.f32 %v382_v6, 0.0 }
  0xef   :  { %793 = vmatmul.mubr.f32.gmra.mxu1 %v407_v8 }
  0xf0   :  { %v242_v11 = vpop.permute.xlu1 %241  ;;  %795 = vmatprep.mubr.msk.f32.mxu1 %vm871_vm0, %v869_v4 }
  0xf1   :  { %v314_v12 = vmul.f32 %v1111_v51, %v242_v11 }
  0xf3   :  { %v339_v14 = vadd.f32 %v314_v12, %v185_v0 }
  0xf4   :  { %v290_v15 = vpop.permute.xlu1 %289 }
  0xf5   :  { %v326_v17 = vmul.f32 %v1111_v51, %v290_v15  ;;  %v371_v23 = vadd.f32 %v1119_v56, %v339_v14 }
  0xf7   :  { %v351_v18 = vadd.f32 %v326_v17, %v197_v5  ;;  %v396_v19 = vmax.f32 %v371_v23, 0.0 }
  0xf9   :  { %v164_v22 = vpop.permute.xlu1 %163  ;;  %760 = vmatmul.mubr.f32.gmra.mxu0 %v396_v19  ;;  %v383_v24 = vadd.f32 %v1119_v56, %v351_v18 }
  0xfa   :  { %762 = vmatprep.mubr.msk.f32.mxu0 %vm871_vm0, %v869_v4  ;;  %v198_v27 = vmul.f32 %v1109_v50, %v164_v22 }
  0xfb   :  { %v408_v25 = vmax.f32 %v383_v24, 0.0 }
  0xfd   :  { %763 = vmatmul.mubr.f32.gmra.mxu0 %v397_v16  ;;  %796 = vmatmul.mubr.f32.gmra.mxu1 %v408_v25 }
  0xfe   :  { %v294_v26 = vpop.permute.xlu1 %293  ;;  %798 = vmatprep.mubr.msk.f32.mxu1 %vm871_vm0, %v869_v4  ;;  %765 = vmatprep.mubr.msk.f32.mxu0 %vm871_vm0, %v869_v4 }
  0xff   :  { %v327_v28 = vmul.f32 %v1111_v51, %v294_v26 }
 0x101   :  { %v352_v29 = vadd.f32 %v327_v28, %v198_v27 }
 0x103   :  { %v109_v30 = vpop.permute.xlu1 %108  ;;  %v384_v31 = vadd.f32 %v1119_v56, %v352_v29 }
 0x104   :  { %v187_v34 = vmul.f32 %v1109_v50, %v109_v30 }
 0x105   :  { %v409_v32 = vmax.f32 %v384_v31, 0.0 }
 0x107   :  { %799 = vmatmul.mubr.f32.gmra.mxu1 %v409_v32 }
 0x108   :  { %v250_v33 = vpop.permute.xlu1 %249  ;;  %801 = vmatprep.mubr.msk.f32.mxu1 %vm871_vm0, %v869_v4  ;;  %v1258_v4 = vld [vmem:[%s1389_s4] ss:$0 sm:$0xff] }
 0x109   :  { %v316_v35 = vmul.f32 %v1111_v51, %v250_v33 }
 0x10b   :  { %v341_v37 = vadd.f32 %v316_v35, %v187_v34 }
 0x10c   :  { %v298_v38 = vpop.permute.xlu1 %297 }
 0x10d   :  { %v328_v40 = vmul.f32 %v1111_v51, %v298_v38  ;;  %v373_v41 = vadd.f32 %v1119_v56, %v341_v37 }
 0x10f   :  { %v353_v42 = vadd.f32 %v328_v40, %v199_v39  ;;  %v398_v43 = vmax.f32 %v373_v41, 0.0 }
 0x111   :  { %766 = vmatmul.mubr.f32.gmra.mxu0 %v398_v43  ;;  %v385_v44 = vadd.f32 %v1119_v56, %v353_v42 }
 0x113   :  { %v410_v45 = vmax.f32 %v385_v44, 0.0 }
 0x115   :  { %802 = vmatmul.mubr.f32.gmra.mxu1 %v410_v45 }
 0x14b   :  { %v500_v46 = vpop.f32.mrf.mxu0 }
 0x14c   :  { %v501_v47 = vadd.f32 %v1258_v4, %v500_v46 }
 0x14d   :  { %v731_v50 = vpop.f32.mrf.mxu0 }
 0x14e   :  { %625 = vst.msk [vmem:[%s1390_s5] sm:$0xff] %vm624_vm1, %v501_v47 }
 0x14f   :  { %v505_v51 = vpop.f32.mrf.mxu0  ;;  %v565_v48 = vpop.f32.mrf.mxu1 }
 0x150   :  { %v506_v56 = vadd.f32 %v1258_v4, %v505_v51  ;;  %v566_v49 = vadd.f32 %v1258_v4, %v565_v48 }
 0x151   :  { %v734_v52 = vpop.f32.mrf.mxu0  ;;  %v770_v20 = vpop.f32.mrf.mxu1 }
 0x152   :  { %626 = vst.msk [vmem:[%s1390_s5 + $0x8] sm:$0xff] %vm624_vm1, %v506_v56  ;;  %638 = vst.msk [vmem:[%s1390_s5 + $0x68] sm:$0xff] %vm624_vm1, %v566_v49 }
 0x159   :  { %v510_v53 = vpop.f32.mrf.mxu0 }
 0x15a   :  { %v511_v54 = vadd.f32 %v1258_v4, %v510_v53 }
 0x15b   :  { %v737_v55 = vpop.f32.mrf.mxu0 }
 0x15c   :  { %627 = vst.msk [vmem:[%s1390_s5 + $0x10] sm:$0xff] %vm624_vm1, %v511_v54 }
 0x168   :  { %v570_v57 = vpop.f32.mrf.mxu1 }
 0x169   :  { %v571_v58 = vadd.f32 %v1258_v4, %v570_v57 }
 0x16a   :  { %v773_v59 = vpop.f32.mrf.mxu1 }
 0x16b   :  { %639 = vst.msk [vmem:[%s1390_s5 + $0x70] sm:$0xff] %vm624_vm1, %v571_v58 }
 0x16c   :  { %v575_v60 = vpop.f32.mrf.mxu1  ;;  %v515_v61 = vpop.f32.mrf.mxu0 }
 0x16d   :  { %v576_v62 = vadd.f32 %v1258_v4, %v575_v60  ;;  %v516_v63 = vadd.f32 %v1258_v4, %v515_v61 }
 0x16e   :  { %v776_v1 = vpop.f32.mrf.mxu1  ;;  %v740_v2 = vpop.f32.mrf.mxu0 }
 0x16f   :  { %640 = vst.msk [vmem:[%s1390_s5 + $0x78] sm:$0xff] %vm624_vm1, %v576_v62  ;;  %628 = vst.msk [vmem:[%s1390_s5 + $0x18] sm:$0xff] %vm624_vm1, %v516_v63 }
 0x171   :  { %v520_v3 = vpop.f32.mrf.mxu0 }
 0x172   :  { %v521_v6 = vadd.f32 %v1258_v4, %v520_v3 }
 0x173   :  { %v743_v7 = vpop.f32.mrf.mxu0 }
 0x174   :  { %629 = vst.msk [vmem:[%s1390_s5 + $0x20] sm:$0xff] %vm624_vm1, %v521_v6 }
 0x175   :  { %v580_v8 = vpop.f32.mrf.mxu1  ;;  %v525_v9 = vpop.f32.mrf.mxu0 }
 0x176   :  { %v581_v10 = vadd.f32 %v1258_v4, %v580_v8  ;;  %v526_v11 = vadd.f32 %v1258_v4, %v525_v9 }
 0x177   :  { %v779_v0 = vpop.f32.mrf.mxu1  ;;  %v746_v12 = vpop.f32.mrf.mxu0 }
 0x178   :  { %641 = vst.msk [vmem:[%s1390_s5 + $0x80] sm:$0xff] %vm624_vm1, %v581_v10  ;;  %630 = vst.msk [vmem:[%s1390_s5 + $0x28] sm:$0xff] %vm624_vm1, %v526_v11 }
 0x17f   :  { %v585_v13 = vpop.f32.mrf.mxu1 }
 0x180   :  { %v586_v14 = vadd.f32 %v1258_v4, %v585_v13 }
 0x181   :  { %v782_v15 = vpop.f32.mrf.mxu1 }
 0x182   :  { %642 = vst.msk [vmem:[%s1390_s5 + $0x88] sm:$0xff] %vm624_vm1, %v586_v14 }
 0x189   :  { %v530_v5 = vpop.f32.mrf.mxu0 }
 0x18a   :  { %v531_v17 = vadd.f32 %v1258_v4, %v530_v5 }
 0x18b   :  { %v749_v23 = vpop.f32.mrf.mxu0 }
 0x18c   :  { %631 = vst.msk [vmem:[%s1390_s5 + $0x30] sm:$0xff] %vm624_vm1, %v531_v17 }
 0x18d   :  { %v590_v18 = vpop.f32.mrf.mxu1  ;;  %v535_v19 = vpop.f32.mrf.mxu0 }
 0x18e   :  { %v591_v21 = vadd.f32 %v1258_v4, %v590_v18  ;;  %v536_v22 = vadd.f32 %v1258_v4, %v535_v19 }
 0x18f   :  { %v785_v24 = vpop.f32.mrf.mxu1  ;;  %v752_v16 = vpop.f32.mrf.mxu0 }
 0x190   :  { %643 = vst.msk [vmem:[%s1390_s5 + $0x90] sm:$0xff] %vm624_vm1, %v591_v21  ;;  %632 = vst.msk [vmem:[%s1390_s5 + $0x38] sm:$0xff] %vm624_vm1, %v536_v22 }
 0x197   :  { %v595_v25 = vpop.f32.mrf.mxu1 }
 0x198   :  { %v596_v26 = vadd.f32 %v1258_v4, %v595_v25 }
 0x199   :  { %v788_v27 = vpop.f32.mrf.mxu1 }
 0x19a   :  { %644 = vst.msk [vmem:[%s1390_s5 + $0x98] sm:$0xff] %vm624_vm1, %v596_v26 }
 0x1a1   :  { %v540_v28 = vpop.f32.mrf.mxu0 }
 0x1a2   :  { %v541_v29 = vadd.f32 %v1258_v4, %v540_v28 }
 0x1a3   :  { %v755_v30 = vpop.f32.mrf.mxu0 }
 0x1a4   :  { %633 = vst.msk [vmem:[%s1390_s5 + $0x40] sm:$0xff] %vm624_vm1, %v541_v29 }
 0x1a5   :  { %v545_v31 = vpop.f32.mrf.mxu0  ;;  %v600_v32 = vpop.f32.mrf.mxu1 }
 0x1a6   :  { %v546_v33 = vadd.f32 %v1258_v4, %v545_v31  ;;  %v601_v34 = vadd.f32 %v1258_v4, %v600_v32 }
 0x1a7   :  { %v758_v35 = vpop.f32.mrf.mxu0  ;;  %v791_v36 = vpop.f32.mrf.mxu1 }
 0x1a8   :  { %634 = vst.msk [vmem:[%s1390_s5 + $0x48] sm:$0xff] %vm624_vm1, %v546_v33  ;;  %645 = vst.msk [vmem:[%s1390_s5 + $0xa0] sm:$0xff] %vm624_vm1, %v601_v34 }
 0x1af   :  { %v605_v37 = vpop.f32.mrf.mxu1 }
 0x1b0   :  { %v606_v38 = vadd.f32 %v1258_v4, %v605_v37 }
 0x1b1   :  { %v794_v39 = vpop.f32.mrf.mxu1 }
 0x1b2   :  { %646 = vst.msk [vmem:[%s1390_s5 + $0xa8] sm:$0xff] %vm624_vm1, %v606_v38 }
 0x1b9   :  { %v550_v40 = vpop.f32.mrf.mxu0 }
 0x1ba   :  { %v551_v41 = vadd.f32 %v1258_v4, %v550_v40 }
 0x1bb   :  { %v761_v42 = vpop.f32.mrf.mxu0 }
 0x1bc   :  { %635 = vst.msk [vmem:[%s1390_s5 + $0x50] sm:$0xff] %vm624_vm1, %v551_v41 }
 0x1bd   :  { %v555_v43 = vpop.f32.mrf.mxu0  ;;  %v610_v44 = vpop.f32.mrf.mxu1 }
 0x1be   :  { %v556_v45 = vadd.f32 %v1258_v4, %v555_v43  ;;  %v611_v46 = vadd.f32 %v1258_v4, %v610_v44 }
 0x1bf   :  { %v764_v47 = vpop.f32.mrf.mxu0  ;;  %v797_v50 = vpop.f32.mrf.mxu1 }
 0x1c0   :  { %636 = vst.msk [vmem:[%s1390_s5 + $0x58] sm:$0xff] %vm624_vm1, %v556_v45  ;;  %647 = vst.msk [vmem:[%s1390_s5 + $0xb0] sm:$0xff] %vm624_vm1, %v611_v46 }
 0x1c7   :  { %v615_v51 = vpop.f32.mrf.mxu1 }
 0x1c8   :  { %v616_v48 = vadd.f32 %v1258_v4, %v615_v51 }
 0x1c9   :  { %v800_v56 = vpop.f32.mrf.mxu1 }
 0x1ca   :  { %648 = vst.msk [vmem:[%s1390_s5 + $0xb8] sm:$0xff] %vm624_vm1, %v616_v48 }
 0x1d1   :  { %v560_v49 = vpop.f32.mrf.mxu0 }
 0x1d2   :  { %v561_v52 = vadd.f32 %v1258_v4, %v560_v49 }
 0x1d3   :  { %v767_v20 = vpop.f32.mrf.mxu0 }
 0x1d4   :  { %637 = vst.msk [vmem:[%s1390_s5 + $0x60] sm:$0xff] %vm624_vm1, %v561_v52 }
 0x1d5   :  { %v620_v53 = vpop.f32.mrf.mxu1 }
 0x1d6   :  { %v621_v54 = vadd.f32 %v1258_v4, %v620_v53 }
 0x1d7   :  { %v803_v55 = vpop.f32.mrf.mxu1 }
 0x1d8   :  { %649 = vst.msk [vmem:[%s1390_s5 + $0xc0] sm:$0xff] %vm624_vm1, %v621_v54 }

</bundles_post_ra>
